<compile_context>
chip_gen: v6e
topology: v6e:2x2x1
jax: 0.10.0
libtpu: 0.0.40
codegen_flags: <defaults>
</compile_context>

<pallas_src>
import functools

import jax
import jax.numpy as jnp
from jax import lax
from jax.experimental import pallas as pl
from jax.experimental.pallas import tpu as pltpu


def _round_up(x, m):
    return -(-x // m) * m


def _focal_from_logpt(log_p_t, alpha, gamma):
    """(-alpha) * (1 - p_t)**gamma * log_p_t on small (tm, 1) vectors."""
    p_t = jnp.exp(log_p_t)
    one_minus = 1.0 - p_t
    g = float(gamma)
    ig = int(g)
    if float(ig) == g and 0 <= ig <= 8:
        fw = jnp.ones_like(one_minus)        # integer gamma: plain multiplies
        for _ in range(ig):
            fw = fw * one_minus
    else:
        fw = one_minus ** g
    return (-float(alpha)) * fw * log_p_t


# --------------------------------------------------------------------------
# Kernel 1: one-hot label pick (default; small / moderate vocabularies).
# Grid: (batch, row_tile, vocab_tile) = ("parallel", "parallel", "arbitrary").
# --------------------------------------------------------------------------
def _focal_kernel_onehot(labels_ref, logits_ref, loss_ref, m_ref, l_ref, t_ref,
                         *, alpha, gamma, tm, tv, V, valid_rows,
                         ragged_rows, ragged_cols):
    i = pl.program_id(1)
    v = pl.program_id(2)
    nv = pl.num_programs(2)

    @pl.when(v == 0)
    def _():
        m_ref[...] = jnp.full_like(m_ref, -jnp.inf)
        l_ref[...] = jnp.zeros_like(l_ref)
        t_ref[...] = jnp.zeros_like(t_ref)

    x = logits_ref[...].astype(jnp.float32)               # (tm, tv)
    col = lax.broadcasted_iota(jnp.int32, x.shape, 1)      # local vocab index

    if ragged_cols:
        # Padded vocab columns on the ragged tile contribute -inf (-> exp 0).
        x = jnp.where(col < (V - v * tv), x, -jnp.inf)

    # Online logsumexp across vocab tiles (single pass when nv == 1).
    m_prev = m_ref[...]
    m_cur = jnp.maximum(m_prev, jnp.max(x, axis=-1, keepdims=True))
    scale = jnp.exp(m_prev - m_cur)
    e = jnp.exp(x - m_cur)
    l_ref[...] = l_ref[...] * scale + jnp.sum(e, axis=-1, keepdims=True)
    m_ref[...] = m_cur

    # Raw logit at the target class (no rescaling needed across vocab tiles).
    labels = labels_ref[...]                                # (tm, 1) int32
    t_ref[...] += jnp.sum(jnp.where(col == (labels - v * tv), x, 0.0),
                          axis=-1, keepdims=True)

    @pl.when(v == nv - 1)
    def _():
        log_p_t = t_ref[...] - (m_ref[...] + jnp.log(l_ref[...]))
        loss = _focal_from_logpt(log_p_t, alpha, gamma)
        if ragged_rows:
            row = lax.broadcasted_iota(jnp.int32, (tm, 1), 0)
            loss = jnp.where(i * tm + row < valid_rows, loss, 0.0)
        loss_ref[...] = loss


# --------------------------------------------------------------------------
# Kernel 2: per-row SMEM label pick (large vocabularies).  The logits are
# viewed as (B, S, V//128, 128) so the label's 128-lane chunk is selected by
# a dynamic slice on the *sublane* axis (no per-element iota/cmp/select).
# --------------------------------------------------------------------------
def _focal_kernel_smempick(labels_ref, logits_ref, loss_ref, m_ref, l_ref,
                           t_ref, *, alpha, gamma, tm, cb, V, valid_rows,
                           label_stride, ragged_rows, ragged_cols):
    b = pl.program_id(0)
    i = pl.program_id(1)
    v = pl.program_id(2)
    nv = pl.num_programs(2)
    tv = cb * 128

    @pl.when(v == 0)
    def _():
        m_ref[...] = jnp.full_like(m_ref, -jnp.inf)
        l_ref[...] = jnp.zeros_like(l_ref)
        t_ref[...] = jnp.zeros_like(t_ref)

    x = logits_ref[...].astype(jnp.float32)                 # (tm, cb, 128)

    if ragged_cols:
        # V % 128 == 0 here, so raggedness is whole-chunk granular.
        c = lax.broadcasted_iota(jnp.int32, x.shape, 1)
        x = jnp.where(c < ((V - v * tv) // 128), x, -jnp.inf)

    m_prev = m_ref[...]                                      # (tm, 1)
    m_loc = jnp.max(x, axis=(1, 2), keepdims=True).reshape(tm, 1)
    m_cur = jnp.maximum(m_prev, m_loc)
    scale = jnp.exp(m_prev - m_cur)
    e = jnp.exp(x - m_cur.reshape(tm, 1, 1))
    l_ref[...] = (l_ref[...] * scale
                  + jnp.sum(e, axis=(1, 2), keepdims=True).reshape(tm, 1))
    m_ref[...] = m_cur

    # Per-row pick: labels come from SMEM (scalar prefetch, pre-clipped to
    # [0, V-1] in the wrapper), only one (1, 128) chunk per row is reduced.
    lane = lax.broadcasted_iota(jnp.int32, (1, 128), 1)
    base = b * label_stride + i * tm
    picks = []
    for r in range(tm):                                      # tm is small here
        lab = labels_ref[base + r]                           # int32 scalar
        lab_local = lab - v * tv
        in_tile = jnp.logical_and(lab_local >= 0, lab_local < tv)
        lab_c = jnp.clip(lab_local, 0, tv - 1)
        chunk = logits_ref[r, pl.ds(lab_c // 128, 1), :]     # (1, 128) native
        hit = jnp.logical_and(lane == (lab_c % 128), in_tile)
        val = jnp.sum(jnp.where(hit, chunk.astype(jnp.float32), 0.0))
        picks.append(val.reshape(1, 1))
    t_ref[...] += jnp.concatenate(picks, axis=0)

    @pl.when(v == nv - 1)
    def _():
        log_p_t = t_ref[...] - (m_ref[...] + jnp.log(l_ref[...]))
        loss = _focal_from_logpt(log_p_t, alpha, gamma)
        if ragged_rows:
            row = lax.broadcasted_iota(jnp.int32, (tm, 1), 0)
            loss = jnp.where(i * tm + row < valid_rows, loss, 0.0)
        loss_ref[...] = loss


# --------------------------------------------------------------------------
# Wrapper
# --------------------------------------------------------------------------
def focal_loss(logits, classifier, labels, *, alpha=1.0, gamma=2.0,
               reduction="mean", label_pick="auto", vocab_tile=None,
               interpret=False):
    """Focal loss over next-token-shifted logits (Pallas TPU).

    `classifier` is accepted but unused, matching the PyTorch module.
    `label_pick`: "auto" | "onehot" | "smem".  `vocab_tile` forces the vocab
    tile size (testing / tuning knob).
    """
    del classifier
    assert reduction in ("mean", "sum", "none")
    assert label_pick in ("auto", "onehot", "smem")

    *lead, S, V = logits.shape
    assert S >= 2, "need at least 2 positions for the next-token shift"
    B = 1
    for d in lead:
        B *= d
    logits3 = logits.reshape(B, S, V)
    labels2 = labels.reshape(B, S)
    valid = S - 1
    itemsize = jnp.dtype(logits.dtype).itemsize

    # ---- hardware-aware budgets -------------------------------------------
    vmem_cap = 64 * 1024 * 1024
    try:
        vmem_cap = int(pltpu.get_tpu_info().vmem_capacity_bytes)
    except Exception:
        pass
    vmem_limit = max(32 * 1024 * 1024,
                     min(int(vmem_cap * 4 // 5), 112 * 1024 * 1024))
    # What the resident logits tile (native dtype, double-buffered) plus its
    # f32 intermediates (~4 tile-sized temps) may occupy.
    budget = int(vmem_limit * 3 // 5)
    target_tile_bytes = (4 if vmem_cap >= 96 * 1024 * 1024 else 2) * 1024 * 1024
    per_col_cost = 2 * itemsize + 4 * 4          # bytes per resident element

    # ---- label-pick strategy ----------------------------------------------
    smem_label_bytes = 4 * _round_up(B * _round_up(valid + 8, 8), 128)
    if label_pick == "auto":
        use_smem = (V >= 8192 and V % 128 == 0
                    and smem_label_bytes <= 256 * 1024)
    elif label_pick == "smem":
        assert V % 128 == 0, "SMEM label pick requires V % 128 == 0"
        use_smem = True
    else:
        use_smem = False

    # ---- vocab tiling -------------------------------------------------------
    Vp = _round_up(V, 128)
    tv_step = 1024 if use_smem else 128   # keeps the chunk dim a multiple of 8
    if vocab_tile is not None:
        tv = int(vocab_tile)
        assert 0 < tv <= V and (tv == V or tv % tv_step == 0)
    elif 8 * Vp * per_col_cost <= budget:
        tv = V                            # whole vocab resident per row tile
    else:
        tv = max(tv_step, (budget // (8 * per_col_cost)) // tv_step * tv_step)
        tv = min(tv, _round_up(V, tv_step))
        if V % tv_step == 0:
            # Prefer a tile that divides V (avoids the ragged-column mask).
            t = tv
            for _ in range(256):
                if V % t == 0 or t <= tv_step:
                    break
                t -= tv_step
            if V % t == 0:
                tv = t
        if tv >= V:
            tv = V
    n_v = -(-V // tv)
    ragged_cols = (n_v * tv != V)

    # ---- row tiling ---------------------------------------------------------
    rows_padded = _round_up(valid, 8)
    row_cost = _round_up(tv, 128) * per_col_cost
    tm_budget = max(8, (budget // row_cost) // 8 * 8)
    tm_target = max(8, (target_tile_bytes // max(1, tv * itemsize)) // 8 * 8)
    tm = max(8, min(tm_budget, tm_target, 1024, rows_padded))
    if tm > S:
        tm = S                             # tiny sequences: full row extent
    n_rows = -(-valid // tm)
    L = n_rows * tm
    ragged_rows = (L != valid)

    # ---- labels -------------------------------------------------------------
    shift_labels = labels2[:, 1:].astype(jnp.int32)          # (B, valid)
    if L != valid:
        shift_labels = jnp.pad(shift_labels, ((0, 0), (0, L - valid)))

    out_shape = jax.ShapeDtypeStruct((B, L, 1), jnp.float32)
    grid = (B, n_rows, n_v)
    scratch = [pltpu.VMEM((tm, 1), jnp.float32)] * 3          # m, l, pick

    if use_smem:
        C = V // 128
        cb = tv // 128
        logits_view = logits3.reshape(B, S, C, 128)           # free reshape
        kernel = functools.partial(
            _focal_kernel_smempick, alpha=float(alpha), gamma=float(gamma),
            tm=tm, cb=cb, V=V, valid_rows=valid, label_stride=L,
            ragged_rows=ragged_rows, ragged_cols=ragged_cols)
        grid_spec = pltpu.PrefetchScalarGridSpec(
            num_scalar_prefetch=1,
            grid=grid,
            in_specs=[pl.BlockSpec((None, tm, cb, 128),
                                   lambda b, i, v, lab: (b, i, v, 0))],
            out_specs=pl.BlockSpec((None, tm, 1),
                                   lambda b, i, v, lab: (b, i, 0)),
            scratch_shapes=scratch)
        labels_arg = jnp.clip(shift_labels, 0, V - 1).reshape(B * L)
        args = (labels_arg, logits_view)
    else:
        kernel = functools.partial(
            _focal_kernel_onehot, alpha=float(alpha), gamma=float(gamma),
            tm=tm, tv=tv, V=V, valid_rows=valid,
            ragged_rows=ragged_rows, ragged_cols=ragged_cols)
        grid_spec = pltpu.PrefetchScalarGridSpec(
            num_scalar_prefetch=0,
            grid=grid,
            in_specs=[pl.BlockSpec((None, tm, 1),
                                   lambda b, i, v: (b, i, 0)),      # labels
                      pl.BlockSpec((None, tm, tv),
                                   lambda b, i, v: (b, i, v))],     # logits
            out_specs=pl.BlockSpec((None, tm, 1),
                                   lambda b, i, v: (b, i, 0)),
            scratch_shapes=scratch)
        labels_arg = shift_labels.reshape(B, L, 1)
        args = (labels_arg, logits3)

    cost = pl.CostEstimate(
        flops=int(6 * B * valid * V),
        transcendentals=int(B * valid * V),
        bytes_accessed=int(B * S * V * itemsize + labels_arg.size * 4
                           + B * L * 4))

    # NOTE: if a bundle dump shows the DMA exposed after the VPU-op reduction,
    # add pipeline_mode=pl.Buffered(3) to the logits BlockSpec.
    loss_rows = pl.pallas_call(
        kernel,
        out_shape=out_shape,
        grid_spec=grid_spec,
        compiler_params=pltpu.CompilerParams(
            dimension_semantics=("parallel", "parallel", "arbitrary"),
            vmem_limit_bytes=vmem_limit),
        cost_estimate=cost,
        interpret=interpret,
    )(*args)

    if reduction == "none":
        # TODO(synk): out-of-range / ignore_index labels are not supported
        # (same as the reference torch module, which gathers with raw labels).
        return loss_rows[:, :valid, :].reshape(B * valid, 1)
    total = jnp.sum(loss_rows)
    if reduction == "mean":
        total = total / jnp.float32(B * valid)
    return total


# --------------------------------------------------------------------------
# Pure-JAX reference and self-tests
# --------------------------------------------------------------------------
def _focal_loss_ref(logits, labels, alpha=1.0, gamma=2.0, reduction="mean"):
    V = logits.shape[-1]
    sl = logits[..., :-1, :].reshape(-1, V).astype(jnp.float32)
    lb = labels[..., 1:].reshape(-1).astype(jnp.int32)
    logp = jax.nn.log_softmax(sl, axis=1)
    log_p_t = jnp.take_along_axis(logp, lb[:, None], axis=1)
    p_t = jnp.exp(log_p_t)
    loss = -alpha * (1.0 - p_t) ** gamma * log_p_t
    if reduction == "mean":
        return loss.mean()
    if reduction == "sum":
        return loss.sum()
    return loss


if __name__ == "__main__":
    key = jax.random.PRNGKey(0)
    ks = jax.random.split(key, 10)
    classifier = jax.random.normal(ks[9], (32, 16), dtype=jnp.float32)  # unused

    def check(out, ref, tol, name):
        assert bool(jnp.allclose(out, ref, rtol=tol, atol=tol)), (name, out, ref)

    # 1) f32, even row tiling, mean reduction
    B, S, V = 2, 9, 128
    lg = jax.random.normal(ks[0], (B, S, V), dtype=jnp.float32)
    lb = jax.random.randint(ks[1], (B, S), 0, V, dtype=jnp.int32)
    out = jax.block_until_ready(focal_loss(lg, classifier, lb))
    check(out, _focal_loss_ref(lg, lb), 1e-5, "t1_mean_f32")

    # 2) ragged row tile (S-1 not a multiple of 8), sum reduction, alpha=0.5
    B, S, V = 2, 14, 128
    lg = jax.random.normal(ks[2], (B, S, V), dtype=jnp.float32)
    lb = jax.random.randint(ks[3], (B, S), 0, V, dtype=jnp.int32)
    out = jax.block_until_ready(
        focal_loss(lg, classifier, lb, alpha=0.5, reduction="sum"))
    check(out, _focal_loss_ref(lg, lb, alpha=0.5, reduction="sum"),
          1e-5, "t2_ragged_sum")

    # 3) bf16 logits flow through the DMA at native dtype
    B, S, V = 2, 9, 256
    lg = jax.random.normal(ks[4], (B, S, V), dtype=jnp.bfloat16)
    lb = jax.random.randint(ks[5], (B, S), 0, V, dtype=jnp.int32)
    out = jax.block_until_ready(focal_loss(lg, classifier, lb))
    check(out, _focal_loss_ref(lg, lb), 1e-4, "t3_bf16")

    # 4) forced vocab tiling (online logsumexp over 2 vocab tiles) + 'none'
    B, S, V = 2, 10, 256
    lg = jax.random.normal(ks[6], (B, S, V), dtype=jnp.float32)
    lb = jax.random.randint(ks[7], (B, S), 0, V, dtype=jnp.int32)
    out = jax.block_until_ready(
        focal_loss(lg, classifier, lb, reduction="none", vocab_tile=128))
    check(out, _focal_loss_ref(lg, lb, reduction="none"), 1e-5, "t4_vtile_none")

    print("KERNEL_OK")
</pallas_src>

<mosaic_0001>
module attributes {stable_mosaic.version = 11 : i64} {
  func.func @_focal_kernel_onehot(%arg0: i32, %arg1: i32, %arg2: i32, %arg3: memref<1x8x1xi32, #tpu.memory_space<vmem>>, %arg4: memref<1x8x128xf32, #tpu.memory_space<vmem>>, %arg5: memref<1x8x1xf32, #tpu.memory_space<vmem>>, %arg6: memref<8x1xf32, #tpu.memory_space<vmem>>, %arg7: memref<8x1xf32, #tpu.memory_space<vmem>>, %arg8: memref<8x1xf32, #tpu.memory_space<vmem>>) attributes {dimension_semantics = [#tpu.dimension_semantics<parallel>, #tpu.dimension_semantics<parallel>, #tpu.dimension_semantics<arbitrary>], iteration_bounds = array<i64: 2, 1, 1>, scalar_prefetch = 0 : i64, scratch_operands = 3 : i64, tpu.core_type = #tpu.core_type<tc>, window_params = [{transform_indices = @transform_0, window_bounds = array<i64: 1, 8, 1>}, {transform_indices = @transform_1, window_bounds = array<i64: 1, 8, 128>}, {transform_indices = @transform_2, window_bounds = array<i64: 1, 8, 1>}]} {
    %c0_i32 = arith.constant 0 : i32
    %0 = arith.cmpi eq, %arg2, %c0_i32 : i32
    %1 = arith.extui %0 : i1 to i32
    %c0_i32_0 = arith.constant 0 : i32
    %2 = arith.cmpi ne, %1, %c0_i32_0 : i32
    scf.if %2 {
      %cst_23 = arith.constant 0xFF800000 : f32
      %39 = vector.broadcast %cst_23 : f32 to vector<8x1xf32>
      %c0_24 = arith.constant 0 : index
      %c0_25 = arith.constant 0 : index
      %40 = vector.load %arg6[%c0_24, %c0_25] : memref<8x1xf32, #tpu.memory_space<vmem>>, vector<8x1xf32>
      tpu.vector_store %arg6[%c0_24, %c0_25], %39 {strides = array<i32>} : memref<8x1xf32, #tpu.memory_space<vmem>>, vector<8x1xf32>,
      %cst_26 = arith.constant 0.000000e+00 : f32
      %41 = vector.broadcast %cst_26 : f32 to vector<8x1xf32>
      %c0_27 = arith.constant 0 : index
      %c0_28 = arith.constant 0 : index
      %42 = vector.load %arg7[%c0_27, %c0_28] : memref<8x1xf32, #tpu.memory_space<vmem>>, vector<8x1xf32>
      tpu.vector_store %arg7[%c0_27, %c0_28], %41 {strides = array<i32>} : memref<8x1xf32, #tpu.memory_space<vmem>>, vector<8x1xf32>,
      %cst_29 = arith.constant 0.000000e+00 : f32
      %43 = vector.broadcast %cst_29 : f32 to vector<8x1xf32>
      %c0_30 = arith.constant 0 : index
      %c0_31 = arith.constant 0 : index
      %44 = vector.load %arg8[%c0_30, %c0_31] : memref<8x1xf32, #tpu.memory_space<vmem>>, vector<8x1xf32>
      tpu.vector_store %arg8[%c0_30, %c0_31], %43 {strides = array<i32>} : memref<8x1xf32, #tpu.memory_space<vmem>>, vector<8x1xf32>,
    } else {
    }
    %c0 = arith.constant 0 : index
    %c0_1 = arith.constant 0 : index
    %c0_2 = arith.constant 0 : index
    %3 = vector.load %arg4[%c0, %c0_1, %c0_2] : memref<1x8x128xf32, #tpu.memory_space<vmem>>, vector<1x8x128xf32>
    %4 = vector.shape_cast %3 : vector<1x8x128xf32> to vector<8x128xf32>
    %5 = tpu.iota {dimensions = array<i32: 1>} : vector<8x128xi32>
    %c0_3 = arith.constant 0 : index
    %c0_4 = arith.constant 0 : index
    %6 = vector.load %arg6[%c0_3, %c0_4] : memref<8x1xf32, #tpu.memory_space<vmem>>, vector<8x1xf32>
    %cst = arith.constant dense<0xFF800000> : vector<8xf32>
    %7 = vector.multi_reduction <maximumf>, %4, %cst [1] : vector<8x128xf32> to vector<8xf32>
    %8 = vector.shape_cast %7 : vector<8xf32> to vector<8x1xf32>
    %9 = arith.maximumf %6, %8 : vector<8x1xf32>
    %10 = arith.subf %6, %9 : vector<8x1xf32>
    %11 = math.exp %10 : vector<8x1xf32>
    %12 = vector.broadcast %9 : vector<8x1xf32> to vector<8x128xf32>
    %13 = arith.subf %4, %12 : vector<8x128xf32>
    %14 = math.exp %13 : vector<8x128xf32>
    %c0_5 = arith.constant 0 : index
    %c0_6 = arith.constant 0 : index
    %15 = vector.load %arg7[%c0_5, %c0_6] : memref<8x1xf32, #tpu.memory_space<vmem>>, vector<8x1xf32>
    %16 = arith.mulf %15, %11 : vector<8x1xf32>
    %cst_7 = arith.constant dense<0.000000e+00> : vector<8xf32>
    %17 = vector.multi_reduction <add>, %14, %cst_7 [1] : vector<8x128xf32> to vector<8xf32>
    %18 = vector.shape_cast %17 : vector<8xf32> to vector<8x1xf32>
    %19 = arith.addf %16, %18 : vector<8x1xf32>
    %c0_8 = arith.constant 0 : index
    %c0_9 = arith.constant 0 : index
    %20 = vector.load %arg7[%c0_8, %c0_9] : memref<8x1xf32, #tpu.memory_space<vmem>>, vector<8x1xf32>
    tpu.vector_store %arg7[%c0_8, %c0_9], %19 {strides = array<i32>} : memref<8x1xf32, #tpu.memory_space<vmem>>, vector<8x1xf32>,
    %c0_10 = arith.constant 0 : index
    %c0_11 = arith.constant 0 : index
    %21 = vector.load %arg6[%c0_10, %c0_11] : memref<8x1xf32, #tpu.memory_space<vmem>>, vector<8x1xf32>
    tpu.vector_store %arg6[%c0_10, %c0_11], %9 {strides = array<i32>} : memref<8x1xf32, #tpu.memory_space<vmem>>, vector<8x1xf32>,
    %c0_12 = arith.constant 0 : index
    %c0_13 = arith.constant 0 : index
    %c0_14 = arith.constant 0 : index
    %22 = vector.load %arg3[%c0_12, %c0_13, %c0_14] : memref<1x8x1xi32, #tpu.memory_space<vmem>>, vector<1x8x1xi32>
    %23 = vector.shape_cast %22 : vector<1x8x1xi32> to vector<8x1xi32>
    %c0_15 = arith.constant 0 : index
    %c0_16 = arith.constant 0 : index
    %24 = vector.load %arg8[%c0_15, %c0_16] : memref<8x1xf32, #tpu.memory_space<vmem>>, vector<8x1xf32>
    %c128_i32 = arith.constant 128 : i32
    %25 = arith.muli %arg2, %c128_i32 : i32
    %26 = vector.broadcast %25 : i32 to vector<8x1xi32>
    %27 = arith.subi %23, %26 : vector<8x1xi32>
    %28 = vector.broadcast %27 : vector<8x1xi32> to vector<8x128xi32>
    %29 = arith.cmpi eq, %5, %28 : vector<8x128xi32>
    %cst_17 = arith.constant 0.000000e+00 : f32
    %30 = vector.broadcast %cst_17 : f32 to vector<8x128xf32>
    %31 = arith.select %29, %4, %30 : vector<8x128xi1>, vector<8x128xf32>
    %cst_18 = arith.constant dense<0.000000e+00> : vector<8xf32>
    %32 = vector.multi_reduction <add>, %31, %cst_18 [1] : vector<8x128xf32> to vector<8xf32>
    %33 = vector.shape_cast %32 : vector<8xf32> to vector<8x1xf32>
    %34 = arith.addf %24, %33 : vector<8x1xf32>
    %c0_19 = arith.constant 0 : index
    %c0_20 = arith.constant 0 : index
    %35 = vector.load %arg8[%c0_19, %c0_20] : memref<8x1xf32, #tpu.memory_space<vmem>>, vector<8x1xf32>
    tpu.vector_store %arg8[%c0_19, %c0_20], %34 {strides = array<i32>} : memref<8x1xf32, #tpu.memory_space<vmem>>, vector<8x1xf32>,
    %c0_i32_21 = arith.constant 0 : i32
    %36 = arith.cmpi eq, %arg2, %c0_i32_21 : i32
    %37 = arith.extui %36 : i1 to i32
    %c0_i32_22 = arith.constant 0 : i32
    %38 = arith.cmpi ne, %37, %c0_i32_22 : i32
    scf.if %38 {
      %c0_23 = arith.constant 0 : index
      %c0_24 = arith.constant 0 : index
      %39 = vector.load %arg8[%c0_23, %c0_24] : memref<8x1xf32, #tpu.memory_space<vmem>>, vector<8x1xf32>
      %c0_25 = arith.constant 0 : index
      %c0_26 = arith.constant 0 : index
      %40 = vector.load %arg6[%c0_25, %c0_26] : memref<8x1xf32, #tpu.memory_space<vmem>>, vector<8x1xf32>
      %c0_27 = arith.constant 0 : index
      %c0_28 = arith.constant 0 : index
      %41 = vector.load %arg7[%c0_27, %c0_28] : memref<8x1xf32, #tpu.memory_space<vmem>>, vector<8x1xf32>
      %42 = math.log %41 : vector<8x1xf32>
      %43 = arith.addf %40, %42 : vector<8x1xf32>
      %44 = arith.subf %39, %43 : vector<8x1xf32>
      %45 = math.exp %44 : vector<8x1xf32>
      %cst_29 = arith.constant 1.000000e+00 : f32
      %46 = vector.broadcast %cst_29 : f32 to vector<8x1xf32>
      %47 = arith.subf %46, %45 : vector<8x1xf32>
      %cst_30 = arith.constant 1.000000e+00 : f32
      %48 = vector.broadcast %cst_30 : f32 to vector<8x1xf32>
      %49 = arith.mulf %48, %47 : vector<8x1xf32>
      %50 = arith.mulf %49, %47 : vector<8x1xf32>
      %cst_31 = arith.constant -1.000000e+00 : f32
      %51 = vector.broadcast %cst_31 : f32 to vector<8x1xf32>
      %52 = arith.mulf %51, %50 : vector<8x1xf32>
      %53 = arith.mulf %52, %44 : vector<8x1xf32>
      %c0_32 = arith.constant 0 : index
      %c0_33 = arith.constant 0 : index
      %c0_34 = arith.constant 0 : index
      %54 = vector.load %arg5[%c0_32, %c0_33, %c0_34] : memref<1x8x1xf32, #tpu.memory_space<vmem>>, vector<1x8x1xf32>
      %55 = vector.shape_cast %54 : vector<1x8x1xf32> to vector<8x1xf32>
      %56 = vector.shape_cast %53 : vector<8x1xf32> to vector<1x8x1xf32>
      tpu.vector_store %arg5[%c0_32, %c0_33, %c0_34], %56 {strides = array<i32>} : memref<1x8x1xf32, #tpu.memory_space<vmem>>, vector<1x8x1xf32>,
    } else {
    }
    return
  }
  func.func @transform_0(%arg0: i32, %arg1: i32, %arg2: i32) -> (i32, i32, i32) {
    %c0_i32 = arith.constant 0 : i32
    %c0_i32_0 = arith.constant 0 : i32
    return %arg0, %arg1, %c0_i32 : i32, i32, i32
  }
  func.func @transform_1(%arg0: i32, %arg1: i32, %arg2: i32) -> (i32, i32, i32) {
    %c0_i32 = arith.constant 0 : i32
    return %arg0, %arg1, %arg2 : i32, i32, i32
  }
  func.func @transform_2(%arg0: i32, %arg1: i32, %arg2: i32) -> (i32, i32, i32) {
    %c0_i32 = arith.constant 0 : i32
    %c0_i32_0 = arith.constant 0 : i32
    return %arg0, %arg1, %c0_i32 : i32, i32, i32
  }
}

</mosaic_0001>

<bundles_post_ra>
// kernel: tpu_custom_call.1
= control target key start
LH: loop header
LB: loop body
LE: loop exit
PB: predicated region body
PF: predicated region fallthrough
CT: control target
= control target key end

     0   :  { %s473_s9 = smov 0   ;;  %s475_s10 = smov 0   ;;  %s524_s0 = inlined_call_operand.vmem [shape: s32[2,8,1], index: 0, kind: input, shape index: {}]   ;;  %s525_s1 = inlined_call_operand.vmem [shape: f32[2,9,128], index: 1, kind: input, shape index: {}]   ;;  %s526_s2 = inlined_call_operand.vmem [shape: f32[2,8,1], index: 2, kind: output, shape index: {}]  }
   0x1   :  { %s477_s11 = smov 0  }
   0x2 LB: > { %s31_s12 = sadd.s32 1, %s449_s10  ;;  %p386_p0 = scmp.ge.s32.totalorder %s453_s11, 1  ;;  %s453_s11 = sphi %s477_s11, %s12_s11   ;;  %s449_s10 = sphi %s475_s10, %s528_s10   ;;  %s445_s9 = sphi %s473_s9, %s527_s9  }
   0x3   : > { %p33_p1 = scmp.ge.s32.totalorder %s31_s12, 2  ;;  %p157_p2 = scmp.lt.s32.totalorder %s453_s11, 3 }
   0x5   : > { %s530_s12 = smov (%p33_p1, %s31_s12), 0  ;;  %p158_p3 = pnand %p386_p0, %p157_p2 }
   0x6   : > { %p194_p4 = scmp.lt.s32.totalorder (!%p158_p3), %s445_s9, 1 }
   0x7   : > { %161 = sbr.rel (%p158_p3) target bundleno = 491 (0x1eb), region = 28 }
   0xc   : > { %vm223_vm0 = vcmask 7168   ;;  %v455_v0 = vmov -inf   ;;  %s532_s9 = smov (!%p194_p4, %s445_s9), 1  ;;  %v456_v2 = vmov 0   ;;  %v457_v4 = vmov 0.0  }
   0xd   : > { %224 = vst.msk [vmem:[#allocation2] sm:$0xff] %vm223_vm0, %v455_v0  ;;  %s393_s13 = sshll.u32 %s532_s9, 4  ;;  %421 = vset.pattern.permute.xlu0 %v456_v2  ;;  %422 = vset.pattern.permute.xlu1 %v456_v2  ;;  %s387_s17 = sshll.u32 %s532_s9, 3  ;;  %225 = vst.msk [vmem:[#allocation3] sm:$0xff] %vm223_vm0, %v457_v4  ;;  %v228_v12 = vlaneseq }
   0xe   : > { %s211_s16 = scalar_lea.vmem %s525_s1, %s393_s13  ;;  %s200_s20 = scalar_lea.vmem %s524_s0, %s387_s17  ;;  %226 = vst.msk [vmem:[#allocation4] sm:$0xff] %vm223_vm0, %v457_v4 }
   0xf   : > { %v227_v1 = vld [vmem:[%s211_s16] sm:$0xff]  ;;  %v229_v13 = vand.u32 127, %v228_v12  ;;  %s218_s23 = scalar_lea.vmem %s526_s2, %s387_s17 }
  0x10   : > { %231 = vmax.xlane.f32.xlu0 %v227_v1  ;;  %v253_v3 = vld [vmem:[%s200_s20] sm:$0xff] }
  0x11   : > { %259 = vperm.xlu1 %422, %v253_v3  }
  0x14   : > { %v230_v5 = vld [vmem:[#allocation2] sm:$0xff]  ;;  %v245_v19 = vld [vmem:[#allocation3] sm:$0xff] }
  0x15   : > { %v254_v23 = vld [vmem:[#allocation4] sm:$0xff] }
  0x8c   : > { %v260_v14 = vpop.permute.xlu1 %259 }
  0x8d   : > { %vm261_vm1 = vcmp.eq.s32.totalorder %v229_v13, %v260_v14 }
  0x8e   : > { %v262_v16 = vsel %vm261_vm1, %v227_v1, 0.0 }
  0x99   : > { %v232_v6 = vpop.xlane.xlu0 %231 }
  0x9a   : > { %v233_v7 = vmax.f32 %v230_v5, %v232_v6 }
  0x9c   : > { %v234_v8 = vsub.f32 %v230_v5, %v233_v7  ;;  %252 = vst.msk [vmem:[#allocation2] sm:$0xff] %vm223_vm0, %v233_v7  ;;  %239 = vperm.xlu0 %421, %v233_v7  }
  0x9e   : > { %v235_v17 = vmul.f32 1.442695, %v234_v8 }
  0xa3   : > { %v271_v29 = vld [vmem:[#allocation2] sm:$0xff] }
 0x117   : > { %v240_v9 = vpop.permute.xlu0 %239 }
 0x118   : > { %v242_v10 = vsub.f32 %v227_v1, %v240_v9 }
 0x11a   : > { %v243_v11 = vmul.f32 1.442695, %v242_v10 }
 0x11c   : > { %423 = vpow2.f32 %v243_v11 }
 0x11d   : > { %425 = vpow2.f32 %v235_v17 }
 0x129   : > { %v424_v15 = vpop.eup %423 }
 0x12a   : > { %247 = vadd.xlane.f32.xlu1 %v424_v15  ;;  %v426_v18 = vpop.eup %425 }
 0x12b   : > { %v246_v20 = vmul.f32 %v426_v18, %v245_v19 }
 0x12e   : > { %263 = vadd.xlane.f32.xlu1 %v262_v16 }
 0x1b3   : > { %v248_v21 = vpop.xlane.xlu1 %247 }
 0x1b4   : > { %v249_v22 = vadd.f32 %v248_v21, %v246_v20 }
 0x1b6   : > { %251 = vst.msk [vmem:[#allocation3] sm:$0xff] %vm223_vm0, %v249_v22 }
 0x1b7   : > { %v264_v24 = vpop.xlane.xlu1 %263 }
 0x1b8   : > { %v265_v25 = vadd.f32 %v264_v24, %v254_v23 }
 0x1ba   : > { %266 = vst.msk [vmem:[#allocation4] sm:$0xff] %vm223_vm0, %v265_v25 }
 0x1bd   : > { %v272_v26 = vld [vmem:[#allocation3] sm:$0xff] }
 0x1be   : > { %427 = vlog2.f32 %v272_v26 }
 0x1c1   : > { %v270_v30 = vld [vmem:[#allocation4] sm:$0xff] }
 0x1cb   : > { %v428_v27 = vpop.eup %427 }
 0x1cc   : > { %v274_v28 = vmul.f32 0.6931472, %v428_v27 }
 0x1ce   : > { %v275_v31 = vadd.f32 %v274_v28, %v271_v29 }
 0x1d0   : > { %v276_v32 = vsub.f32 %v270_v30, %v275_v31 }
 0x1d2   : > { %v277_v33 = vmul.f32 1.442695, %v276_v32 }
 0x1d4   : > { %429 = vpow2.f32 %v277_v33 }
 0x1e1   : > { %v430_v34 = vpop.eup %429 }
 0x1e2   : > { %v279_v35 = vsub.f32 1.0, %v430_v34 }
 0x1e4   : > { %v280_v36 = vmul.f32 %v279_v35, %v279_v35 }
 0x1e6   : > { %v281_v37 = vmul.f32 -1.0, %v280_v36 }
 0x1e8   : > { %v282_v38 = vmul.f32 %v281_v37, %v276_v32 }
 0x1ea   : > { %283 = vst.msk [vmem:[%s218_s23] sm:$0xff] %vm223_vm0, %v282_v38 }
 0x1eb PF: > { %s12_s11 = sadd.s32 1, %s453_s11   ;;  %s527_s9 = smov %s449_s10 }
 0x1ec   : > { %p9_p5 = scmp.ge.s32.totalorder %s12_s11, 4   ;;  %s528_s10 = smov %s530_s12 }
 0x1ee   :  { %11 = sbr.rel (!%p9_p5) target bundleno = 2 (0x2), region = 69 }

</bundles_post_ra>
